<compile_context>
chip_gen: v7x
topology: tpu7x:2x2x1
jax: 0.10.0
libtpu: 0.0.40
codegen_flags: <defaults>
</compile_context>

<pallas_src>
import functools
import math

import jax
import jax.numpy as jnp
from jax import lax
from jax.experimental import pallas as pl
from jax.experimental.pallas import tpu as pltpu


# ----------------------------- pointwise 1x1 convs -----------------------------

def _conv_in_kernel(x_ref, w_ref, b_ref, o_ref):
    # x: (Cin, Tt) f32 (native NCT layout), w: (Cin, F) bf16, b: (1, F) -> o: (Tt, F)
    o_ref[...] = lax.dot_general(
        x_ref[...].astype(jnp.bfloat16), w_ref[...],
        dimension_numbers=(((0,), (0,)), ((), ())),          # contract Cin: folds transpose
        preferred_element_type=jnp.float32) + b_ref[...]


def _conv_out_kernel(h_ref, w_ref, b_ref, o_ref):
    # h: (Tt, F) f32, w: (C, F) bf16, b: (C, 1) -> o: (C, Tt)  (lane-dense along T)
    o_ref[...] = lax.dot_general(
        w_ref[...], h_ref[...].astype(jnp.bfloat16),
        dimension_numbers=(((1,), (1,)), ((), ())),
        preferred_element_type=jnp.float32) + b_ref[...]


def _time_tile(T):
    for t in (512, 256, 128):
        if T % t == 0:
            return t
    return T


def conv_in(x_nct, w, b):
    """1x1 Conv1d on (B, Cin, T) -> (B, T, F); input transpose folded into the matmul."""
    B, Cin, T = x_nct.shape
    F = w.shape[1]
    Tt = _time_tile(T)
    return pl.pallas_call(
        _conv_in_kernel,
        out_shape=jax.ShapeDtypeStruct((B, T, F), jnp.float32),
        grid=(B, T // Tt),
        in_specs=[pl.BlockSpec((None, Cin, Tt), lambda bi, ti: (bi, 0, ti)),
                  pl.BlockSpec((Cin, F), lambda bi, ti: (0, 0)),
                  pl.BlockSpec((1, F), lambda bi, ti: (0, 0))],
        out_specs=pl.BlockSpec((None, Tt, F), lambda bi, ti: (bi, ti, 0)),
        compiler_params=pltpu.CompilerParams(
            dimension_semantics=("parallel", "parallel")),
    )(x_nct, w, b)


def conv_out(h, w, b):
    """1x1 Conv1d on (B, T, F) -> (B, C, T); output transpose folded into the matmul."""
    B, T, F = h.shape
    C = w.shape[0]
    Tt = _time_tile(T)
    return pl.pallas_call(
        _conv_out_kernel,
        out_shape=jax.ShapeDtypeStruct((B, C, T), jnp.float32),
        grid=(B, T // Tt),
        in_specs=[pl.BlockSpec((None, Tt, F), lambda bi, ti: (bi, ti, 0)),
                  pl.BlockSpec((C, F), lambda bi, ti: (0, 0)),
                  pl.BlockSpec((C, 1), lambda bi, ti: (0, 0))],
        out_specs=pl.BlockSpec((None, C, Tt), lambda bi, ti: (bi, 0, ti)),
        compiler_params=pltpu.CompilerParams(
            dimension_semantics=("parallel", "parallel")),
    )(h, w, b)


# ----------------------------- fused encoder stack -----------------------------

def _encoder_kernel(dil_ref, x_ref, w_ref, b_ref, w1_ref, b1_ref, w2_ref, b2_ref,
                    o_ref, act_ref, xpad_ref, kvpad_ref, xstack_ref,
                    *, K, T, F, L, pad_max, eps, scale):
    """One grid step = one layer of one batch row; activation stays in VMEM across L."""
    l = pl.program_id(1)
    dil = dil_ref[l]                                   # dilation = 2**l, from SMEM

    @pl.when(l == 0)
    def _init():
        act_ref[...] = x_ref[...]
        if pad_max > 0:                                # zero ONLY the halos, once per row
            xpad_ref[pl.ds(0, pad_max), :] = jnp.zeros((pad_max, F), jnp.float32)
            xpad_ref[pl.ds(pad_max + T, pad_max), :] = jnp.zeros((pad_max, F), jnp.float32)
            kvpad_ref[pl.ds(0, pad_max), :] = jnp.zeros((pad_max, 2 * F), jnp.float32)
            kvpad_ref[pl.ds(pad_max + T, pad_max), :] = jnp.zeros((pad_max, 2 * F), jnp.float32)

    x = act_ref[...]                                   # (T, F) residual input of this layer
    xpad_ref[pl.ds(pad_max, T), :] = x

    # Stack the K dilation-shifted, zero-padded conv taps into one bf16 MXU operand.
    for m in range(K):                                 # K is small; static unroll
        off = (m - K // 2) * dil
        xstack_ref[:, m * F:(m + 1) * F] = (
            xpad_ref[pl.ds(pad_max + off, T), :].astype(jnp.bfloat16))

    # Fused [dilated-conv | q | k | v]: one MXU push with a K*F-deep contraction and a
    # full 4F-wide (128+ lane) result.
    out4 = jnp.dot(xstack_ref[...], w_ref[...],
                   preferred_element_type=jnp.float32) + b_ref[...]        # (T, 4F)
    conv = out4[:, 0:F]
    q = out4[:, F:2 * F]
    kvpad_ref[pl.ds(pad_max, T), :] = out4[:, 2 * F:4 * F]                 # padded k|v band

    # Banded single-head attention over the K dilated taps, per-tap (T,1) softmax.
    t_idx = lax.broadcasted_iota(jnp.int32, (T, 1), 0)
    scores, vals = [], []
    for m in range(K):
        off = (m - K // 2) * dil
        kv = kvpad_ref[pl.ds(pad_max + off, T), :]                         # (T, 2F)
        valid = ((t_idx + off) >= 0) & ((t_idx + off) < T)
        s_m = jnp.sum(q * kv[:, 0:F], axis=-1, keepdims=True) * scale
        scores.append(jnp.where(valid, s_m, -1e30))
        vals.append(kv[:, F:2 * F])
    s_max = scores[0]
    for m in range(1, K):
        s_max = jnp.maximum(s_max, scores[m])
    ps = [jnp.exp(s - s_max) for s in scores]
    den = ps[0]
    for m in range(1, K):
        den = den + ps[m]
    inv = pl.reciprocal(den, approx=True)              # EUP slot
    att = (ps[0] * inv) * vals[0]
    for m in range(1, K):
        att = att + (ps[m] * inv) * vals[m]

    y = conv + att

    # InstanceNorm1d over time (no affine), single pass: var = E[y^2] - mean^2.
    mean = jnp.mean(y, axis=0, keepdims=True)
    var = jnp.mean(y * y, axis=0, keepdims=True) - mean * mean
    yn = (y - mean) * lax.rsqrt(var + eps)

    # FFN (ReLU) + residual.
    h1 = jnp.maximum(
        jnp.dot(yn.astype(jnp.bfloat16), w1_ref[...],
                preferred_element_type=jnp.float32) + b1_ref[...], 0.0)
    new = x + (jnp.dot(h1.astype(jnp.bfloat16), w2_ref[...],
                       preferred_element_type=jnp.float32) + b2_ref[...])
    act_ref[...] = new                                 # stays resident across the L axis

    @pl.when(l == L - 1)
    def _finalize():
        o_ref[...] = new


def encoder_layers(h, params, *, kernel_size):
    """All MixedConvAttention layers in one pallas_call: (B,T,F) -> (B,T,F)."""
    B, T, F = h.shape
    K = kernel_size
    L = int(params["dilations"].shape[0])
    pad_max = (K // 2) * (2 ** (L - 1))
    kern = functools.partial(_encoder_kernel, K=K, T=T, F=F, L=L, pad_max=pad_max,
                             eps=1e-5, scale=1.0 / math.sqrt(F))

    grid_spec = pltpu.PrefetchScalarGridSpec(
        num_scalar_prefetch=1,                                  # dilations table -> SMEM
        grid=(B, L),
        in_specs=[
            pl.BlockSpec((None, T, F), lambda b, l, d: (b, 0, 0)),           # activation in
            pl.BlockSpec((None, K * F, 4 * F), lambda b, l, d: (l, 0, 0)),   # fused conv|qkv W
            pl.BlockSpec((None, 1, 4 * F), lambda b, l, d: (l, 0, 0)),
            pl.BlockSpec((None, F, F), lambda b, l, d: (l, 0, 0)),           # FFN W1
            pl.BlockSpec((None, 1, F), lambda b, l, d: (l, 0, 0)),
            pl.BlockSpec((None, F, F), lambda b, l, d: (l, 0, 0)),           # FFN W2
            pl.BlockSpec((None, 1, F), lambda b, l, d: (l, 0, 0)),
        ],
        out_specs=pl.BlockSpec((None, T, F), lambda b, l, d: (b, 0, 0)),
        scratch_shapes=[
            pltpu.VMEM((T, F), jnp.float32),                       # resident activation
            pltpu.VMEM((T + 2 * pad_max, F), jnp.float32),         # zero-padded x
            pltpu.VMEM((T + 2 * pad_max, 2 * F), jnp.float32),     # zero-padded k|v
            pltpu.VMEM((T, K * F), jnp.bfloat16),                  # stacked conv taps
        ])

    # VMEM budget: scratches + double-buffered activation in/out + double-buffered weights.
    scratch_bytes = T * F * 4 + (T + 2 * pad_max) * 3 * F * 4 + T * K * F * 2
    io_bytes = 2 * 2 * T * F * 4
    w_bytes = 2 * ((K * F * 4 * F + 2 * F * F) * 2 + (4 * F + 2 * F) * 4)
    vmem_limit = int(min(64 * 2 ** 20,                          # v7x physical ceiling
                         max(16 * 2 ** 20, 2 * (scratch_bytes + io_bytes + w_bytes))))

    cost = pl.CostEstimate(
        flops=int(2 * B * L * T * (K * F * 4 * F + 2 * F * F)),
        transcendentals=int(B * L * T * (K + 1)),
        bytes_accessed=int(2 * B * T * F * 4 + B * L * 2 * (K * F * 4 * F + 2 * F * F)),
    )

    return pl.pallas_call(
        kern,
        out_shape=jax.ShapeDtypeStruct((B, T, F), jnp.float32),
        grid_spec=grid_spec,
        compiler_params=pltpu.CompilerParams(
            dimension_semantics=("parallel", "arbitrary"),
            vmem_limit_bytes=vmem_limit),
        cost_estimate=cost,
    )(params["dilations"], h, params["mix_w"], params["mix_b"],
      params["ffn_w1"], params["ffn_b1"], params["ffn_w2"], params["ffn_b2"])


# ----------------------------- model -----------------------------

def init_params(key, num_layers, num_f_maps, input_dim, num_classes, kernel_size):
    F, K, L = num_f_maps, kernel_size, num_layers
    keys = iter(jax.random.split(key, 8 + 12 * L))

    def w(shape, scale=0.1):
        return scale * jax.random.normal(next(keys), shape, jnp.float32)

    mix_w, mix_b = [], []
    ffn_w1, ffn_b1, ffn_w2, ffn_b2 = [], [], [], []
    c = K // 2
    for _ in range(L):
        # TODO(synk): checkpoint conversion — PyTorch Conv1d weight (out,in,K) must be
        #             permuted to (K,in,out) and the q/k/v weights transposed before
        #             packing into this combined (K*F, 4F) matrix.
        conv_w = w((K, F, F))                                     # (tap, F_in, F_out)
        Wl = jnp.zeros((K * F, 4 * F), jnp.float32)
        Wl = Wl.at[:, 0:F].set(conv_w.reshape(K * F, F))
        Wl = Wl.at[c * F:(c + 1) * F, F:2 * F].set(w((F, F)))     # wq (centre tap = x)
        Wl = Wl.at[c * F:(c + 1) * F, 2 * F:3 * F].set(w((F, F)))  # wk
        Wl = Wl.at[c * F:(c + 1) * F, 3 * F:4 * F].set(w((F, F)))  # wv
        mix_w.append(Wl)
        mix_b.append(jnp.concatenate([w((1, F)) for _ in range(4)], axis=1))
        ffn_w1.append(w((F, F))); ffn_b1.append(w((1, F)))
        ffn_w2.append(w((F, F))); ffn_b2.append(w((1, F)))

    return {
        "num_classes": num_classes,
        "dilations": jnp.asarray([2 ** i for i in range(L)], jnp.int32),
        "conv_in_w": w((input_dim, F)).astype(jnp.bfloat16),
        "conv_in_b": w((1, F)),
        "conv_out_w": w((num_classes, F)).astype(jnp.bfloat16),   # PyTorch (C_out, F_in) layout
        "conv_out_b": w((num_classes, 1)),
        "mix_w": jnp.stack(mix_w).astype(jnp.bfloat16),           # (L, K*F, 4F)
        "mix_b": jnp.stack(mix_b),                                # (L, 1, 4F)
        "ffn_w1": jnp.stack(ffn_w1).astype(jnp.bfloat16),
        "ffn_b1": jnp.stack(ffn_b1),
        "ffn_w2": jnp.stack(ffn_w2).astype(jnp.bfloat16),
        "ffn_b2": jnp.stack(ffn_b2),
    }


def encoder_model_forward(params, x_nct, *, kernel_size):
    """get_features=False / eval-mode forward.  x_nct: (B, input_dim, T) -> (B, C, T)."""
    # Dropout2d channel / temporal dropouts are identities in eval mode.
    h = conv_in(x_nct, params["conv_in_w"], params["conv_in_b"])       # (B, T, F)
    h = encoder_layers(h, params, kernel_size=kernel_size)             # (B, T, F)
    return conv_out(h, params["conv_out_w"], params["conv_out_b"])     # (B, C, T)


if __name__ == "__main__":
    B, input_dim, T = 2, 8, 16
    num_layers, num_f_maps, num_classes, kernel_size = 3, 32, 10, 3

    key = jax.random.PRNGKey(0)
    pkey, xkey = jax.random.split(key)
    params = init_params(pkey, num_layers, num_f_maps, input_dim,
                         num_classes, kernel_size)
    x = jax.random.normal(xkey, (B, input_dim, T), jnp.float32)  # PyTorch (N, C, T) layout

    out = encoder_model_forward(params, x, kernel_size=kernel_size)
    out = jax.block_until_ready(out)
    assert out.shape == (B, num_classes, T), out.shape
    assert bool(jnp.all(jnp.isfinite(out)))
    print("KERNEL_OK")
</pallas_src>

<mosaic_0001>
module attributes {stable_mosaic.version = 11 : i64} {
  func.func @_conv_in_kernel(%arg0: i32, %arg1: i32, %arg2: memref<1x8x16xf32, #tpu.memory_space<vmem>>, %arg3: memref<8x32xbf16, #tpu.memory_space<vmem>>, %arg4: memref<1x32xf32, #tpu.memory_space<vmem>>, %arg5: memref<1x16x32xf32, #tpu.memory_space<vmem>>) attributes {dimension_semantics = [#tpu.dimension_semantics<parallel>, #tpu.dimension_semantics<parallel>], iteration_bounds = array<i64: 2, 1>, scalar_prefetch = 0 : i64, scratch_operands = 0 : i64, tpu.core_type = #tpu.core_type<tc>, window_params = [{transform_indices = @transform_0, window_bounds = array<i64: 1, 8, 16>}, {pipeline_mode = #tpu.pipeline_mode<synchronous>, transform_indices = @transform_1, window_bounds = array<i64: 8, 32>}, {pipeline_mode = #tpu.pipeline_mode<synchronous>, transform_indices = @transform_2, window_bounds = array<i64: 1, 32>}, {transform_indices = @transform_3, window_bounds = array<i64: 1, 16, 32>}]} {
    %c0 = arith.constant 0 : index
    %c0_0 = arith.constant 0 : index
    %c0_1 = arith.constant 0 : index
    %0 = vector.load %arg2[%c0, %c0_0, %c0_1] : memref<1x8x16xf32, #tpu.memory_space<vmem>>, vector<1x8x16xf32>
    %1 = vector.shape_cast %0 : vector<1x8x16xf32> to vector<8x16xf32>
    %2 = arith.truncf %1 : vector<8x16xf32> to vector<8x16xbf16>
    %c0_2 = arith.constant 0 : index
    %c0_3 = arith.constant 0 : index
    %3 = vector.load %arg3[%c0_2, %c0_3] : memref<8x32xbf16, #tpu.memory_space<vmem>>, vector<8x32xbf16>
    %cst = arith.constant dense<0.000000e+00> : vector<16x32xf32>
    %4 = tpu.matmul %2, %3, %cst {dimension_numbers = #tpu.dot_dimension_numbers<[0], [0], [1], [1], [0, 1, 1, 1], [], []>} : vector<8x16xbf16>, vector<8x32xbf16>, vector<16x32xf32> -> vector<16x32xf32>
    %c0_4 = arith.constant 0 : index
    %c0_5 = arith.constant 0 : index
    %5 = vector.load %arg4[%c0_4, %c0_5] : memref<1x32xf32, #tpu.memory_space<vmem>>, vector<1x32xf32>
    %6 = vector.broadcast %5 : vector<1x32xf32> to vector<16x32xf32>
    %7 = arith.addf %4, %6 : vector<16x32xf32>
    %c0_6 = arith.constant 0 : index
    %c0_7 = arith.constant 0 : index
    %c0_8 = arith.constant 0 : index
    %8 = vector.load %arg5[%c0_6, %c0_7, %c0_8] : memref<1x16x32xf32, #tpu.memory_space<vmem>>, vector<1x16x32xf32>
    %9 = vector.shape_cast %8 : vector<1x16x32xf32> to vector<16x32xf32>
    %10 = vector.shape_cast %7 : vector<16x32xf32> to vector<1x16x32xf32>
    tpu.vector_store %arg5[%c0_6, %c0_7, %c0_8], %10 {strides = array<i32>} : memref<1x16x32xf32, #tpu.memory_space<vmem>>, vector<1x16x32xf32>,
    return
  }
  func.func @transform_0(%arg0: i32, %arg1: i32) -> (i32, i32, i32) {
    %c0_i32 = arith.constant 0 : i32
    %c0_i32_0 = arith.constant 0 : i32
    return %arg0, %c0_i32, %arg1 : i32, i32, i32
  }
  func.func @transform_1(%arg0: i32, %arg1: i32) -> (i32, i32) {
    %c0_i32 = arith.constant 0 : i32
    %c0_i32_0 = arith.constant 0 : i32
    %c0_i32_1 = arith.constant 0 : i32
    return %c0_i32, %c0_i32_0 : i32, i32
  }
  func.func @transform_2(%arg0: i32, %arg1: i32) -> (i32, i32) {
    %c0_i32 = arith.constant 0 : i32
    %c0_i32_0 = arith.constant 0 : i32
    %c0_i32_1 = arith.constant 0 : i32
    return %c0_i32, %c0_i32_0 : i32, i32
  }
  func.func @transform_3(%arg0: i32, %arg1: i32) -> (i32, i32, i32) {
    %c0_i32 = arith.constant 0 : i32
    %c0_i32_0 = arith.constant 0 : i32
    return %arg0, %arg1, %c0_i32 : i32, i32, i32
  }
}

</mosaic_0001>

<bundles_post_ra>
// kernel: tpu_custom_call.1
= control target key start
LH: loop header
LB: loop body
LE: loop exit
PB: predicated region body
PF: predicated region fallthrough
CT: control target
= control target key end

     0   :  { %8 = vsyncpa [#allocation3], 0  ;;  %s907_s0 = inlined_call_operand.hbm [shape: f32[2,8,16], index: 0, kind: input, shape index: {}]   ;;  %s908_s1 = inlined_call_operand.hbm [shape: bf16[8,32], index: 1, kind: input, shape index: {}]   ;;  %s909_s2 = inlined_call_operand.vmem [shape: f32[1,32], index: 2, kind: input, shape index: {}]   ;;  %s910_s3 = inlined_call_operand.hbm [shape: f32[2,16,32], index: 3, kind: output, shape index: {}]  }
   0x1   :  { %10 = vsyncpa [#allocation3 + $0x1], 0 }
   0x2   :  { %11 = vsyncpa [#allocation6], 0 }
   0x3   :  { %12 = vsyncpa [#allocation4], 0 }
   0x4   :  { %14 = vsyncpa [#allocation4 + $0x1], 0  ;;  %s685_s12 = smov 0   ;;  %s687_s13 = smov 0  }
   0x5   :  { %s689_s14 = smov 0   ;;  %s691_s15 = smov 0  }
   0x6   :  { %s693_s16 = smov 0   ;;  %s695_s17 = smov 0  }
   0x7 LB: > { %s407_s18 = sadd.s32 4294967295, %s656_s17   ;;  %s408_s19 = sadd.s32 4294967294, %s656_s17   ;;  %s656_s17 = sphi %s695_s17, %s20_s17   ;;  %s652_s16 = sphi %s693_s16, %s935_s16   ;;  %s648_s15 = sphi %s691_s15, %s934_s15   ;;  %s644_s14 = sphi %s689_s14, %s933_s14   ;;  %s640_s13 = sphi %s687_s13, %s932_s13   ;;  %s636_s12 = sphi %s685_s12, %s931_s12  }
   0x8   : > { %p54_p0 = scmp.ne.s32.totalorder %s640_s13, %s636_s12  ;;  %p719_p1 = scmp.eq.s32.totalorder %s407_s18, 0 }
   0x9   : > { %p723_p2 = scmp.eq.s32.totalorder %s407_s18, 1  ;;  %p128_p3 = scmp.eq.s32.totalorder %s408_s19, 1 }
   0xa   : > { %s915_s20 = scalar_select %p719_p1, 1, 0 }
   0xb   : > { %s916_s21 = scalar_select %p723_p2, 1, 0 }
   0xc   : > { %p729_p4 = por %p719_p1, %p54_p0  ;;  %p409_p5 = scmp.ge.s32.totalorder %s656_s17, 1 }
   0xd   : > { %p734_p6 = por %p128_p3, %p54_p0  ;;  %p135_p7 = scmp.lt.s32.totalorder %s656_s17, 3 }
   0xe   : > { %s917_s22 = scalar_select %p729_p4, 1, 0 }
   0xf   : > { %s918_s23 = scalar_select %p734_p6, 1, 0 }
  0x10   : > { %p739_p8 = pnand %p409_p5, %p135_p7  ;;  %s658_s25 = smov [#allocation5]  }
  0x11   : > { %s148_s26 = sshll.u32 %s658_s25, 4  ;;  %s32_s28 = sadd.s32 1, %s652_s16  ;;  %s149_s26 = int_to_ptr.vmem [resolvable:$true] %s148_s26 }
  0x12   : > { %s919_s24 = scalar_select %p739_p8, 1, 0 }
  0x13   : > { %p442_p10 = pneg %p739_p8  ;;  %s41_s29 = sadd.s32 1, %s644_s14 }
  0x14   : > { %p754_p12 = scmp.ge.s32.totalorder %s32_s28, 2  ;;  %s512_s6 = scalar_lea.hbm %s908_s1, 64 }
  0x15   : > { %p748_p11 = pnand %p442_p10, %p719_p1  ;;  %p513_p13 = scmp.ne.s32.totalorder %s908_s1, %s512_s6 }
  0x16   : > { %s921_s30 = scalar_select %p754_p12, 1, 0 }
  0x17   : > { %p514_p0 = pneg %p748_p11  ;;  %p519_p7 = scmp.lt.u32.totalorder %s512_s6, %s908_s1 }
  0x19   : > { %p515_p3 = pnand %p514_p0, %p513_p13 }
  0x1b   : > { %p516_p5 = pneg %p515_p3 }
  0x1d   : > { %p521_p10 = pnand %p519_p7, %p516_p5 }
  0x1f   : > { %524 = shalt.err (!%p521_p10)
}
  0x20   : > { %s525_s11 = scalar_lea.vmem %s149_s26, 64  ;;  %p533_p4 = scmp.lt.s32.totalorder %s149_s26, %s149_s26 }
  0x21   : > { %p526_p9 = scmp.ne.s32.totalorder %s149_s26, %s525_s11  ;;  %p534_p8 = scmp.lt.s32.totalorder %s525_s11, %s525_s11 }
  0x23   : > { %p528_p6 = pnand %p526_p9, %p514_p0  ;;  %p535_p2 = por %p534_p8, %p533_p4 }
  0x25   : > { %p529_p1 = pneg %p528_p6 }
  0x27   : > { %p536_p12 = pnand %p535_p2, %p529_p1 }
  0x29   : > { %539 = shalt.err (!%p536_p12)
}
  0x2a   : > { %445 = dma.hbm_to_vmem [thread:$0]  (!%p748_p11), %s908_s1, 64, %s149_s26, [#allocation6]  }
  0x2b   : > { %p922_p4 = scmp.ne.s32.totalorder %s921_s30, 0  ;;  %p48_p1 = scmp.ne.s32.totalorder %s644_s14, %s640_s13 }
  0x2c   : > { %p49_p2 = scmp.eq.s32.totalorder %s656_s17, 0  ;;  %p455_p6 = scmp.lt.s32.totalorder %s656_s17, 2 }
  0x2d   : > { %s937_s28 = smov (%p922_p4, %s32_s28), 0  ;;  %p923_p12 = scmp.ne.s32.totalorder %s916_s21, 0 }
  0x2e   : > { %s36_s25 = ssub.s32 %s652_s16, %s937_s28  ;;  %p50_p9 = por %p49_p2, %p48_p1 }
  0x2f   : > { %p39_p8 = scmp.eq.s32.totalorder %s36_s25, 0  ;;  %p786_p13 = por %p923_p12, %p48_p1 }
  0x30   : > { %s162_s4 = sand.u32 1, %s644_s14   ;;  %s413_s30 = sshll.u32 %s652_s16, 7 }
  0x31   : > { %s794_s5 = scalar_select %p39_p8, %s644_s14, %s41_s29  }
  0x32   : > { %s412_s26 = sshll.u32 %s162_s4, 3  ;;  %s800_s8 = scalar_lea.hbm %s907_s0, %s413_s30 }
  0x33   : > { %s166_s21 = scalar_lea.vmem [#allocation2], %s412_s26  ;;  %p804_p11 = pnand %p455_p6, %p50_p9 }
  0x34   : > { %s174_s9 = sshll.u32 %s166_s21, 4  ;;  %s163_s29 = scalar_lea.sflag [#allocation3], %s162_s4  ;;  %s802_s9 = int_to_ptr.vmem [resolvable:$true] %s174_s9 }
  0x35   : > { %s540_s11 = scalar_lea.hbm %s800_s8, 128  ;;  %p542_p3 = pneg %p804_p11 }
  0x36   : > { %p541_p0 = scmp.ne.s32.totalorder %s800_s8, %s540_s11  ;;  %s545_s25 = scalar_lea.hbm %s907_s0, 256 }
  0x37   : > { %p546_p10 = scmp.lt.u32.totalorder %s800_s8, %s907_s0  ;;  %p547_p4 = scmp.lt.u32.totalorder %s545_s25, %s540_s11 }
  0x38   : > { %p543_p5 = pnand %p542_p3, %p541_p0  ;;  %p549_p2 = scmp.lt.u32.totalorder %s540_s11, %s800_s8 }
  0x39   : > { %p548_p1 = por %p547_p4, %p546_p10 }
  0x3a   : > { %p544_p7 = pneg %p543_p5 }
  0x3b   : > { %p550_p6 = por %p549_p2, %p548_p1 }
  0x3d   : > { %p551_p8 = pnand %p550_p6, %p544_p7 }
  0x3f   : > { %554 = shalt.err (!%p551_p8)
}
  0x40   : > { %s555_s4 = scalar_lea.vmem %s802_s9, 128  ;;  %s659_s6 = smov [#allocation2]  }
  0x41   : > { %p556_p9 = scmp.ne.s32.totalorder %s802_s9, %s555_s4  ;;  %s560_s7 = sshll.u32 %s659_s6, 4  ;;  %s561_s7 = int_to_ptr.vmem [resolvable:$false] %s560_s7 }
  0x42   : > { %s562_s21 = scalar_lea.vmem %s561_s7, 256  ;;  %p563_p5 = scmp.lt.s32.totalorder %s802_s9, %s561_s7 }
  0x43   : > { %p558_p12 = pnand %p556_p9, %p542_p3  ;;  %p564_p10 = scmp.lt.s32.totalorder %s562_s21, %s555_s4 }
  0x45   : > { %p559_p0 = pneg %p558_p12  ;;  %p565_p4 = por %p564_p10, %p563_p5 }
  0x47   : > { %p566_p1 = pnand %p565_p4, %p559_p0 }
  0x49   : > { %569 = shalt.err (!%p566_p1)
}
  0x4a   : > { %449 = dma.hbm_to_vmem [thread:$0]  (!%p804_p11), %s800_s8, 128, %s802_s9, %s163_s29  }
  0x4b   : > { %p926_p7 = scmp.ne.s32.totalorder %s919_s24, 0 }
  0x4c   : > { %s836_s11 = sand.u32 (!%p926_p7), 1, %s640_s13   ;;  %p927_p3 = scmp.ne.s32.totalorder (!%p926_p7), %s917_s22, 0 }
  0x4d   : > { %183 = sbr.rel (%p926_p7) target bundleno = 425 (0x1a9), region = 32  ;;  %s415_s18 = sshll.u32 (!%p926_p7), %s836_s11, 3 }
  0x4e   : > { %s186_s19 = scalar_lea.sflag (!%p926_p7), [#allocation3], %s836_s11  ;;  %s189_s25 = scalar_lea.vmem (!%p926_p7), [#allocation2], %s415_s18 }
  0x54   : > { %623 = dma.done.wait (%p927_p3), %s186_s19, 128  }
  0x55   : > { %625 = vsyncadd (%p927_p3), %s186_s19, 4294967168  ;;  %p928_p2 = scmp.ne.s32.totalorder %s915_s20, 0 }
  0x57   : > { %627 = dma.done.wait (%p928_p2), [#allocation6], 64  }
  0x58   : > { %629 = vsyncadd (%p928_p2), [#allocation6], 4294967232  ;;  %v660_v0 = vmov 0.0   ;;  %vm661_vm0 = vmmov 0   ;;  %vm248_vm1 = vcmask 1043456   ;;  %v218_v1 = vld [vmem:[%s189_s25] sm:$0xff] }
  0x59   : > { %428 = vmatprep.subr.bf16.mxu0 %v660_v0  ;;  %430 = vmatprep.mubr.msk.bf16.mxu0 %vm661_vm0, %v660_v0  ;;  %v220_v2 = vld [vmem:[#allocation5] sm:$0xf]  ;;  %v219_v3 = vpack.c.bf16 %v218_v1, %v218_v1  ;;  %vm244_vm2 = vcmask 64512   ;;  %s417_s22 = sshll.u32 %s836_s11, 4  ;;  %v418_v6 = vld [vmem:[%s909_s2] ss:$0 sm:$0xff] }
  0x5a   : > { %v250_v4 = vsel %vm248_vm1, %v220_v2, 0  ;;  %s215_s8 = scalar_lea.vmem [#allocation7], %s417_s22  ;;  %s425_s10 = sshll.u32 %s648_s15, 8  ;;  %vm293_vm3 = vcmask 261120  }
  0x5b   : > { %429 = vmatpush3.bf16.msra.mxu0 %v250_v4  ;;  %228 = vxpose.xlu0.c.b16.start.end [1/1] (short) (narrow) %v219_v3, 16  ;;  %s312_s9 = sshll.u32 %s215_s8, 4  ;;  %s858_s30 = scalar_lea.hbm %s910_s3, %s425_s10  ;;  %s853_s9 = int_to_ptr.vmem [resolvable:$true] %s312_s9 }
  0x5c   : > { %s297_s15 = scalar_lea.sflag [#allocation4], %s836_s11  ;;  %s570_s4 = scalar_lea.vmem %s853_s9, 256 }
  0x5d   : > { %p571_p11 = scmp.ne.s32.totalorder %s853_s9, %s570_s4  ;;  %s662_s6 = smov [#allocation7]  }
  0x5e   : > { %s574_s7 = sshll.u32 %s662_s6, 4  ;;  %s575_s7 = int_to_ptr.vmem [resolvable:$false] %s574_s7 }
  0x5f   : > { %p572_p6 = pnand %p571_p11, %p786_p13  ;;  %s576_s21 = scalar_lea.vmem %s575_s7, 512 }
  0x60   : > { %p577_p9 = scmp.lt.s32.totalorder %s853_s9, %s575_s7  ;;  %p578_p12 = scmp.lt.s32.totalorder %s576_s21, %s570_s4 }
  0x61   : > { %p573_p8 = pneg %p572_p6 }
  0x62   : > { %p579_p0 = por %p578_p12, %p577_p9 }
  0x64   : > { %p580_p5 = pnand %p579_p0, %p573_p8 }
  0xc1   : > { %v236_v5 = vpop.trf.xlu0 }
  0xc2   : > { %431 = vmatmul.mubr.msk.bf16.vlgmr.msra.gmra.mrb[0].mxu0 %vm244_vm2, %v236_v5 }
 0x195   : > { %v286_v7 = vpop.f32.mrb[0].mxu0 }
 0x196   : > { %v287_v8 = vadd.f32 %v418_v6, %v286_v7  ;;  %v432_v9 = vpop.f32.mrb[1].mxu0 }
 0x197   : > { %v289_v10 = vpop.f32.mrb[2].mxu0 }
 0x198   : > { %294 = vst.msk [vmem:[%s215_s8] sm:$0xff] %vm293_vm3, %v287_v8  ;;  %v290_v11 = vadd.f32 %v418_v6, %v289_v10  ;;  %v433_v12 = vpop.f32.mrb[3].mxu0 }
 0x19a   : > { %295 = vst.msk [vmem:[%s215_s8 + $0x8] sm:$0xff] %vm293_vm3, %v290_v11 }
 0x19b   : > { %583 = shalt.err (!%p580_p5)
}
 0x19c   : > { %s584_s18 = scalar_lea.hbm %s858_s30, 256  ;;  %s588_s22 = scalar_lea.hbm %s910_s3, 512 }
 0x19d   : > { %p585_p10 = scmp.ne.s32.totalorder %s858_s30, %s584_s18  ;;  %p589_p7 = scmp.lt.u32.totalorder %s858_s30, %s910_s3 }
 0x19e   : > { %p590_p3 = scmp.lt.u32.totalorder %s588_s22, %s584_s18  ;;  %p592_p11 = scmp.lt.u32.totalorder %s584_s18, %s858_s30 }
 0x19f   : > { %p586_p4 = pnand %p585_p10, %p786_p13 }
 0x1a0   : > { %p591_p2 = por %p590_p3, %p589_p7 }
 0x1a1   : > { %p587_p1 = pneg %p586_p4 }
 0x1a2   : > { %p593_p6 = por %p592_p11, %p591_p2 }
 0x1a4   : > { %p594_p8 = pnand %p593_p6, %p587_p1 }
 0x1a6   : > { %597 = shalt.err (!%p594_p8)
}
 0x1a7   : > { %s663_s8 = smov 128   ;;  %s664_s10 = smov 8  }
 0x1a8   : > { %440 = dma.vmem_to_hbm [thread:$0]  (%p786_p13), %s853_s9, 256, %s858_s30, %s297_s15, %s663_s8, %s663_s8, %s664_s10  }
 0x1a9 PF: > { %s327_s29 = sand.u32 1, %s636_s12   ;;  %p929_p9 = scmp.ne.s32.totalorder %s918_s23, 0 }
 0x1aa   : > { %p930_p12 = scmp.ge.s32.totalorder %s656_s17, 2  ;;  %s328_s26 = scalar_lea.sflag [#allocation4], %s327_s29 }
 0x1ac   : > { %p451_p0 = pnand %p930_p12, %p929_p9 }
 0x1ae   : > { %631 = dma.done.wait (!%p451_p0), %s328_s26, 256  }
 0x1af   : > { %633 = vsyncadd (!%p451_p0), %s328_s26, 4294967040  ;;  %s20_s17 = sadd.s32 1, %s656_s17   ;;  %s931_s12 = smov %s640_s13 }
 0x1b0   : > { %p17_p5 = scmp.ge.s32.totalorder %s20_s17, 4   ;;  %s932_s13 = smov %s644_s14 }
 0x1b1   : > { %s933_s14 = smov %s794_s5  ;;  %s934_s15 = smov %s652_s16 }
 0x1b2   : > { %s935_s16 = smov %s937_s28  ;;  %19 = sbr.rel (!%p17_p5) target bundleno = 7 (0x7), region = 81 }
 0x1b9   :  { %333 = vsyncpa [#allocation3], 1 }
 0x1ba   :  { %335 = vsyncpa [#allocation3 + $0x1], 1 }
 0x1bb   :  { %336 = vsyncpa [#allocation6], 1 }
 0x1bc   :  { %337 = vsyncpa [#allocation4], 1 }
 0x1bd   :  { %339 = vsyncpa [#allocation4 + $0x1], 1 }

</bundles_post_ra>
